<compile_context>
chip_gen: v7x
topology: tpu7x:2x2x1
jax: 0.10.0
libtpu: 0.0.40
codegen_flags: <defaults>
</compile_context>

<pallas_src>
import jax
import jax.numpy as jnp
from jax.experimental import pallas as pl
from jax.experimental.pallas import tpu as pltpu


def conv_tanh_kernel(p_ref, w_ref, o_ref):
    # p_ref : (KKp, nb*HW)   im2col patches + ones row, lane axis = n*HW + h*W + w
    # w_ref : (Cout, KKp)    conv weights flattened over (Cin, kh, kw) + bias column
    # o_ref : (nb, Cout, HW) NCHW output block with spatial flattened
    nb, _, hw = o_ref.shape
    # Single MXU contraction for the whole block; bias is already folded in.
    res = jnp.tanh(
        jnp.dot(w_ref[...], p_ref[...], preferred_element_type=jnp.float32)
    )  # (Cout, nb*HW), f32
    if nb == 1:
        o_ref[0] = res
    else:
        for n in range(nb):  # static unroll; n*hw is a static lane offset
            o_ref[n] = res[:, n * hw:(n + 1) * hw]


def _pick_batch_block(N, HW, KKp, Cout, bytes_per=4):
    """Number of batch items per grid step (must divide N)."""
    if N <= 1 or (HW % 128) != 0:
        # Non-lane-aligned HW: use one full-array block (always a legal BlockSpec).
        return N
    budget = 8 * 1024 * 1024  # per-step VMEM target (double-buffered in + out)
    per_item = 2 * (KKp + Cout) * HW * bytes_per
    nb = max(1, min(N, budget // max(per_item, 1)))
    if nb >= N:
        nb = max(1, N // 2)  # keep >=2 grid steps so v7x can use both TensorCores
    while N % nb:
        nb -= 1
    return nb


def conv2d_tanh_pallas(x_nchw, weight_oihw, bias):
    """x_nchw: (N, Cin, H, W) f32; weight_oihw: (Cout, Cin, 3, 3); bias: (Cout,)."""
    N, Cin, H, W = x_nchw.shape
    Cout = weight_oihw.shape[0]
    HW = H * W
    KK = Cin * 9
    KKp = KK + 1  # +1 ones row for the folded bias

    # Wrapper-side im2col, built directly in (Cin, 9, N, H, W) order so the final
    # reshape to (KK, N*HW) is metadata-only.  Only the tiny input is transposed.
    x_cnhw = jnp.transpose(x_nchw.astype(jnp.float32), (1, 0, 2, 3))    # (Cin, N, H, W)
    x_pad = jnp.pad(x_cnhw, ((0, 0), (0, 0), (1, 1), (1, 1)))           # (Cin, N, H+2, W+2)
    cols = [x_pad[:, :, kh:kh + H, kw:kw + W] for kh in range(3) for kw in range(3)]
    patches = jnp.stack(cols, axis=1).reshape(KK, N * HW)               # (27, N*HW)
    patches = jnp.concatenate(
        [patches, jnp.ones((1, N * HW), jnp.float32)], axis=0)          # (28, N*HW)

    w2d = weight_oihw.reshape(Cout, KK).astype(jnp.float32)             # OIHW flatten
    w_aug = jnp.concatenate(
        [w2d, bias.reshape(Cout, 1).astype(jnp.float32)], axis=1)       # (Cout, 28)

    nb = _pick_batch_block(N, HW, KKp, Cout)
    grid = (N // nb,)

    cost = pl.CostEstimate(
        flops=2 * N * Cout * KKp * HW,
        transcendentals=N * Cout * HW,
        bytes_accessed=4 * (KKp * N * HW + Cout * KKp + N * Cout * HW),
    )

    out = pl.pallas_call(
        conv_tanh_kernel,
        out_shape=jax.ShapeDtypeStruct((N, Cout, HW), jnp.float32),
        grid=grid,
        in_specs=[
            pl.BlockSpec((KKp, nb * HW), lambda i: (0, i)),   # lane block per batch-block
            pl.BlockSpec((Cout, KKp), lambda i: (0, 0)),      # weights: resident
        ],
        out_specs=pl.BlockSpec((nb, Cout, HW), lambda i: (i, 0, 0)),
        compiler_params=pltpu.CompilerParams(
            dimension_semantics=("parallel",),                # shards across TCs on v7x
            vmem_limit_bytes=32 * 1024 * 1024,
        ),
        cost_estimate=cost,
    )(patches, w_aug)

    # Already NCHW; splitting the trailing dim is a free (metadata-only) reshape.
    return out.reshape(N, Cout, H, W)


def model_forward(x_nchw, weight, bias):
    v1 = conv2d_tanh_pallas(x_nchw, weight, bias)
    if x_nchw.shape[0] == 1:
        # TODO(synk): PyTorch batch==1 branch uses an undefined `input_tensor` for conv3d +
        # trilinear interpolate; it is unreachable/broken, so it is not implemented.
        return v1
    return v1


if __name__ == "__main__":
    key = jax.random.PRNGKey(0)
    k_x, k_w, k_b = jax.random.split(key, 3)

    # Small shapes consistent with the module: batch=2 (!=1 branch), Cin=Cout=3, spatial=16.
    N, Cin, H, W = 2, 3, 16, 16
    Cout, K = 3, 3

    x1 = jax.random.normal(k_x, (N, Cin, H, W), dtype=jnp.float32)
    # Deterministic Conv2d params (PyTorch-style uniform init bound).
    bound = 1.0 / (Cin * K * K) ** 0.5
    weight = jax.random.uniform(k_w, (Cout, Cin, K, K), jnp.float32, -bound, bound)
    bias = jax.random.uniform(k_b, (Cout,), jnp.float32, -bound, bound)

    out = model_forward(x1, weight, bias)
    jax.block_until_ready(out)

    # Sanity check against XLA's conv (not required, just a guard).
    ref = jnp.tanh(
        jax.lax.conv_general_dilated(
            x1, weight, window_strides=(1, 1), padding=((1, 1), (1, 1)),
            dimension_numbers=("NCHW", "OIHW", "NCHW"),
        ) + bias.reshape(1, Cout, 1, 1)
    )
    assert out.shape == (N, Cout, H, W)
    assert jnp.max(jnp.abs(out - ref)) < 1e-5

    print("KERNEL_OK")
</pallas_src>

<mosaic_0001>
module attributes {stable_mosaic.version = 11 : i64} {
  func.func @conv_tanh_kernel(%arg0: i32, %arg1: memref<28x256xf32, #tpu.memory_space<vmem>>, %arg2: memref<3x28xf32, #tpu.memory_space<vmem>>, %arg3: memref<1x3x256xf32, #tpu.memory_space<vmem>>) attributes {dimension_semantics = [#tpu.dimension_semantics<parallel>], iteration_bounds = array<i64: 2>, scalar_prefetch = 0 : i64, scratch_operands = 0 : i64, tpu.core_type = #tpu.core_type<tc>, window_params = [{transform_indices = @transform_0, window_bounds = array<i64: 28, 256>}, {pipeline_mode = #tpu.pipeline_mode<synchronous>, transform_indices = @transform_1, window_bounds = array<i64: 3, 28>}, {transform_indices = @transform_2, window_bounds = array<i64: 1, 3, 256>}]} {
    %c0 = arith.constant 0 : index
    %c0_0 = arith.constant 0 : index
    %0 = vector.load %arg2[%c0, %c0_0] : memref<3x28xf32, #tpu.memory_space<vmem>>, vector<3x28xf32>
    %c0_1 = arith.constant 0 : index
    %c0_2 = arith.constant 0 : index
    %1 = vector.load %arg1[%c0_1, %c0_2] : memref<28x256xf32, #tpu.memory_space<vmem>>, vector<28x256xf32>
    %cst = arith.constant dense<0.000000e+00> : vector<3x256xf32>
    %2 = tpu.matmul %0, %1, %cst {dimension_numbers = #tpu.dot_dimension_numbers<[1], [0], [0], [1], [0, 0, 1, 1], [], []>} : vector<3x28xf32>, vector<28x256xf32>, vector<3x256xf32> -> vector<3x256xf32>
    %3 = math.tanh %2 : vector<3x256xf32>
    %c0_3 = arith.constant 0 : index
    %c0_4 = arith.constant 0 : index
    %c0_5 = arith.constant 0 : index
    %4 = vector.load %arg3[%c0_3, %c0_4, %c0_5] : memref<1x3x256xf32, #tpu.memory_space<vmem>>, vector<1x3x256xf32>
    %5 = vector.shape_cast %4 : vector<1x3x256xf32> to vector<3x256xf32>
    %6 = vector.shape_cast %3 : vector<3x256xf32> to vector<1x3x256xf32>
    tpu.vector_store %arg3[%c0_3, %c0_4, %c0_5], %6 {strides = array<i32>} : memref<1x3x256xf32, #tpu.memory_space<vmem>>, vector<1x3x256xf32>,
    return
  }
  func.func @transform_0(%arg0: i32) -> (i32, i32) {
    %c0_i32 = arith.constant 0 : i32
    %c0_i32_0 = arith.constant 0 : i32
    return %c0_i32, %arg0 : i32, i32
  }
  func.func @transform_1(%arg0: i32) -> (i32, i32) {
    %c0_i32 = arith.constant 0 : i32
    %c0_i32_0 = arith.constant 0 : i32
    %c0_i32_1 = arith.constant 0 : i32
    return %c0_i32, %c0_i32_0 : i32, i32
  }
  func.func @transform_2(%arg0: i32) -> (i32, i32, i32) {
    %c0_i32 = arith.constant 0 : i32
    %c0_i32_0 = arith.constant 0 : i32
    %c0_i32_1 = arith.constant 0 : i32
    return %arg0, %c0_i32, %c0_i32_0 : i32, i32, i32
  }
}

</mosaic_0001>

<bundles_post_ra>
// kernel: tpu_custom_call.1
= control target key start
LH: loop header
LB: loop body
LE: loop exit
PB: predicated region body
PF: predicated region fallthrough
CT: control target
= control target key end

     0   :  { %7 = vsyncpa [#allocation3], 0  ;;  %s709_s0 = inlined_call_operand.hbm [shape: f32[28,512], index: 0, kind: input, shape index: {}]   ;;  %s710_s1 = inlined_call_operand.hbm [shape: f32[3,28], index: 1, kind: input, shape index: {}]   ;;  %s711_s2 = inlined_call_operand.vmem [shape: f32[2,3,256], index: 2, kind: output, shape index: {}]  }
   0x1   :  { %9 = vsyncpa [#allocation3 + $0x1], 0 }
   0x2   :  { %10 = vsyncpa [#allocation5], 0  ;;  %s561_s9 = smov 0   ;;  %s563_s10 = smov 0  }
   0x3   :  { %s565_s11 = smov 0   ;;  %s567_s12 = smov 0  }
   0x4 LB: > { %s580_s13 = sadd.s32 4294967295, %s537_s12   ;;  %s583_s14 = sadd.s32 1, %s537_s12   ;;  %s537_s12 = sphi %s567_s12, %s729_s12   ;;  %s533_s11 = sphi %s565_s11, %s728_s11   ;;  %s529_s10 = sphi %s563_s10, %s727_s10   ;;  %s525_s9 = sphi %s561_s9, %s726_s9  }
   0x5   : > { %s20_s15 = ssub.s32 %s537_s12, %s583_s14  ;;  %s23_s16 = sadd.s32 1, %s533_s11 }
   0x6   : > { %p21_p0 = scmp.eq.s32.totalorder %s20_s15, 0  ;;  %p30_p1 = scmp.ne.s32.totalorder %s533_s11, %s529_s10 }
   0x7   : > { %p31_p2 = scmp.eq.s32.totalorder %s537_s12, 0  ;;  %p36_p3 = scmp.ne.s32.totalorder %s529_s10, %s525_s9 }
   0x8   : > { %s593_s17 = scalar_select %p21_p0, %s533_s11, %s23_s16  }
   0x9   : > { %p595_p4 = por %p31_p2, %p30_p1  ;;  %p712_p5 = scmp.eq.s32.totalorder %s580_s13, 0 }
   0xa   : > { %p354_p6 = scmp.ge.s32.totalorder %s537_s12, 1  ;;  %p94_p7 = scmp.lt.s32.totalorder %s537_s12, 3 }
   0xb   : > { %p604_p8 = por %p712_p5, %p36_p3  ;;  %s539_s21 = smov [#allocation4]  }
   0xc   : > { %p608_p9 = pnand %p354_p6, %p94_p7  ;;  %s107_s22 = sshll.u32 %s539_s21, 4  ;;  %s108_s22 = int_to_ptr.vmem [resolvable:$true] %s107_s22 }
   0xd   : > { %s717_s19 = scalar_select %p604_p8, 1, 0 }
   0xe   : > { %s718_s20 = scalar_select %p608_p9, 1, 0 }
   0xf   : > { %p388_p10 = pneg %p608_p9  ;;  %p397_p11 = scmp.lt.s32.totalorder %s537_s12, 2 }
  0x10   : > { %s118_s23 = sand.u32 1, %s533_s11   ;;  %s441_s29 = scalar_lea.hbm %s710_s1, 64 }
  0x11   : > { %p618_p12 = pnand %p388_p10, %p712_p5  ;;  %p624_p13 = pnand %p397_p11, %p595_p4 }
  0x12   : > { %s357_s26 = sshll.u32 %s118_s23, 6  ;;  %p442_p0 = scmp.ne.s32.totalorder %s710_s1, %s441_s29 }
  0x13   : > { %s720_s25 = scalar_select %p624_p13, 1, 0 }
  0x14   : > { %p443_p1 = pneg %p618_p12  ;;  %p448_p4 = scmp.lt.u32.totalorder %s441_s29, %s710_s1 }
  0x16   : > { %p444_p2 = pnand %p443_p1, %p442_p0 }
  0x18   : > { %p445_p3 = pneg %p444_p2 }
  0x1a   : > { %p450_p6 = pnand %p448_p4, %p445_p3 }
  0x1c   : > { %453 = shalt.err (!%p450_p6)
}
  0x1d   : > { %s454_s6 = scalar_lea.vmem %s108_s22, 64  ;;  %p462_p5 = scmp.lt.s32.totalorder %s108_s22, %s108_s22 }
  0x1e   : > { %p455_p7 = scmp.ne.s32.totalorder %s108_s22, %s454_s6  ;;  %p463_p8 = scmp.lt.s32.totalorder %s454_s6, %s454_s6 }
  0x20   : > { %p457_p10 = pnand %p455_p7, %p443_p1  ;;  %p464_p9 = por %p463_p8, %p462_p5 }
  0x22   : > { %p458_p11 = pneg %p457_p10 }
  0x24   : > { %p465_p13 = pnand %p464_p9, %p458_p11 }
  0x26   : > { %468 = shalt.err (!%p465_p13)
}
  0x27   : > { %391 = dma.hbm_to_vmem [thread:$0]  (!%p618_p12), %s710_s1, 64, %s108_s22, [#allocation5]  }
  0x28   : > { %s370_s9 = sshll.u32 %s537_s12, 8  ;;  %s122_s21 = scalar_lea.vmem [#allocation2], %s357_s26 }
  0x29   : > { %s648_s18 = scalar_lea.hbm %s709_s0, %s370_s9  ;;  %s129_s27 = sshll.u32 %s122_s21, 4  ;;  %s650_s27 = int_to_ptr.vmem [resolvable:$true] %s129_s27 }
  0x2a   : > { %s652_s24 = scalar_lea.sflag [#allocation3], %s118_s23  ;;  %s469_s28 = scalar_lea.hbm %s648_s18, 1024 }
  0x2b   : > { %p470_p5 = scmp.ne.s32.totalorder %s648_s18, %s469_s28  ;;  %p721_p8 = scmp.ne.s32.totalorder %s720_s25, 0 }
  0x2c   : > { %s474_s29 = scalar_lea.hbm %s709_s0, 2048  ;;  %p475_p0 = scmp.lt.u32.totalorder %s648_s18, %s709_s0 }
  0x2d   : > { %p471_p9 = pneg %p721_p8  ;;  %p476_p1 = scmp.lt.u32.totalorder %s474_s29, %s469_s28 }
  0x2e   : > { %p478_p3 = scmp.lt.u32.totalorder %s469_s28, %s648_s18 }
  0x2f   : > { %p472_p12 = pnand %p471_p9, %p470_p5  ;;  %p477_p2 = por %p476_p1, %p475_p0 }
  0x31   : > { %p473_p13 = pneg %p472_p12  ;;  %p479_p4 = por %p478_p3, %p477_p2 }
  0x33   : > { %p480_p6 = pnand %p479_p4, %p473_p13 }
  0x35   : > { %483 = shalt.err (!%p480_p6)
}
  0x36   : > { %s484_s23 = scalar_lea.vmem %s650_s27, 1024  ;;  %s540_s26 = smov [#allocation2]  }
  0x37   : > { %p485_p7 = scmp.ne.s32.totalorder %s650_s27, %s484_s23  ;;  %s489_s4 = sshll.u32 %s540_s26, 4  ;;  %s490_s4 = int_to_ptr.vmem [resolvable:$false] %s489_s4 }
  0x38   : > { %s491_s5 = scalar_lea.vmem %s490_s4, 2048  ;;  %p492_p5 = scmp.lt.s32.totalorder %s650_s27, %s490_s4 }
  0x39   : > { %p487_p10 = pnand %p485_p7, %p471_p9  ;;  %p493_p12 = scmp.lt.s32.totalorder %s491_s5, %s484_s23 }
  0x3b   : > { %p488_p11 = pneg %p487_p10  ;;  %p494_p0 = por %p493_p12, %p492_p5 }
  0x3d   : > { %p495_p1 = pnand %p494_p0, %p488_p11 }
  0x3f   : > { %498 = shalt.err (!%p495_p1)
}
  0x40   : > { %s541_s6 = smov 512   ;;  %s542_s7 = smov 256  }
  0x41   : > { %s543_s8 = smov 16   ;;  %p722_p9 = scmp.ne.s32.totalorder %s718_s20, 0 }
  0x42   : > { %395 = dma.hbm_to_vmem [thread:$0]  (!%p721_p8), %s648_s18, 1024, %s650_s27, %s652_s24, %s541_s6, %s542_s7, %s543_s8  }
  0x43   : > { %141 = sbr.rel (%p722_p9) target bundleno = 316 (0x13c), region = 28  ;;  %s143_s9 = sand.u32 (!%p722_p9), 1, %s529_s10  }
  0x44   : > { %s361_s15 = sshll.u32 (!%p722_p9), %s143_s9, 6  ;;  %s144_s16 = scalar_lea.sflag (!%p722_p9), [#allocation3], %s143_s9 }
  0x45   : > { %s147_s21 = scalar_lea.vmem (!%p722_p9), [#allocation2], %s361_s15  ;;  %p723_p13 = scmp.ne.s32.totalorder (!%p722_p9), %s717_s19, 0 }
  0x4a   : > { %516 = dma.done.wait (%p723_p13), %s144_s16, 1024  }
  0x4b   : > { %518 = vsyncadd (%p723_p13), %s144_s16, 4294966272  ;;  %p724_p2 = scmp.eq.s32.totalorder %s580_s13, 0 }
  0x4d   : > { %520 = dma.done.wait (%p724_p2), [#allocation5], 64   ;;  %p725_p3 = pmov %p724_p2 }
  0x4e   : > { %v544_v0 = vmov 0.0   ;;  %vm191_vm0 = vcmask 1043456   ;;  %v180_v1 = vld [vmem:[%s147_s21 + $0x8] sm:$0xff]  ;;  %v182_v2 = vld [vmem:[%s147_s21 + $0x18] sm:$0xff]  ;;  %v179_v3 = vld [vmem:[%s147_s21] sm:$0xff]  ;;  %vm545_vm1 = vmmov 1  }
  0x4f   : > { %522 = vsyncadd (%p725_p3), [#allocation5], 4294967232  ;;  %262 = vmatprep.mubr.f32.mxu0 %v544_v0  ;;  %v372_v4 = vpack.c.bf16 %v182_v2, %v180_v1  ;;  %v181_v5 = vld [vmem:[%s147_s21 + $0x10] sm:$0xff]  ;;  %v184_v6 = vld [vmem:[%s147_s21 + $0x28] sm:$0xff]  ;;  %vm187_vm3 = vcmask 228352   ;;  %p173_p8 = scmp.lt.s32.totalorder %s580_s13, 1 }
  0x50   : > { %v186_v7 = vld [vmem:[%s147_s21 + $0x38] sm:$0xf]  ;;  %v374_v8 = vpack.c.bf16 %v181_v5, %v179_v3  ;;  %vm377_vm2 = vmpackc.low %vm191_vm0, %vm545_vm1  ;;  %v183_v10 = vld [vmem:[%s147_s21 + $0x20] sm:$0xff] }
  0x51   : > { %v376_v9 = vpack.c.bf16 %v186_v7, %v184_v6  ;;  %v185_v11 = vld [vmem:[%s147_s21 + $0x30] sm:$0xf]  ;;  %373 = vmatprep.subr.bf16.mxu0 %v372_v4  ;;  %v178_v13 = vld [vmem:[#allocation4] sm:$0x7]  ;;  %s731_s13 = smov (!%p173_p8, %s580_s13), 1 }
  0x52   : > { %375 = vmatpush1.bf16.msra.mxu0 %v374_v8  ;;  %v379_v12 = vpack.c.bf16 %v185_v11, %v183_v10  ;;  %s371_s19 = sshll.u32 %s731_s13, 3 }
  0x53   : > { %378 = vmatprep.subr.msk.bf16.mxu0 %vm377_vm2, %v376_v9  ;;  %s177_s18 = scalar_lea.vmem %s711_s2, %s371_s19 }
  0x56   : > { %381 = vmatpush1.bf16.msk.msra.mxu0 %vm377_vm2, %v379_v12 }
  0x59   : > { %367 = vmatmul.mubr.msk.f32.vlgmr.msra.gmra.mrb[0].mxu0 %vm187_vm3, %v178_v13 }
 0x12c   : > { %v264_v14 = vpop.f32.mrb[0].mxu0 }
 0x12d   : > { %437 = vtanh.f32 %v264_v14  ;;  %v266_v15 = vpop.f32.mrb[1].mxu0 }
 0x12e   : > { %439 = vtanh.f32 %v266_v15 }
 0x137   : > { %v438_v16 = vpop.eup %437 }
 0x138   : > { %v440_v17 = vpop.eup %439 }
 0x139   : > { %v273_v18 = vcombine.low %v438_v16, %v440_v17 }
 0x13b   : > { %275 = vst [vmem:[%s177_s18] sm:$0x77] %v273_v18 }
 0x13c PF: > { %p13_p4 = scmp.ge.s32.totalorder %s583_s14, 4   ;;  %s726_s9 = smov %s529_s10 }
 0x13d   : > { %s727_s10 = smov %s533_s11  ;;  %s728_s11 = smov %s593_s17 }
 0x13e   : > { %s729_s12 = smov %s583_s14  ;;  %15 = sbr.rel (!%p13_p4) target bundleno = 4 (0x4), region = 72 }
 0x145   :  { %297 = vsyncpa [#allocation3], 1 }
 0x146   :  { %299 = vsyncpa [#allocation3 + $0x1], 1 }
 0x147   :  { %300 = vsyncpa [#allocation5], 1 }

</bundles_post_ra>
